<compile_context>
chip_gen: v6e
topology: v6e:2x2x1
jax: 0.10.0
libtpu: 0.0.40
codegen_flags: <defaults>
</compile_context>

<pallas_src>
from functools import partial

import numpy as np
import jax
import jax.numpy as jnp
from jax.experimental import pallas as pl
from jax.experimental.pallas import tpu as pltpu


def _round_up(x, m):
    return (x + m - 1) // m * m


def _ldam_kernel(logits_ref, target_ref, m_ref, out_ref, acc_ref, *,
                 s, n_valid, tile_n, tiles_per_split, need_row_mask):
    # logits_ref: [TILE_N, C]  native dtype (VMEM block, no class padding)
    # target_ref: [TILE_N, 1]  int32 (VMEM block)
    # m_ref:      [1, C]       f32 (resident VMEM block)
    # out_ref:    [1, 1, 128]  f32 per-split partial sum (written on last tile)
    # acc_ref:    [1, 1]       f32 SMEM scratch accumulator (per core / split)
    p = pl.program_id(0)      # batch split ("parallel" -> both TCs on v7x)
    i = pl.program_id(1)      # tile within split ("arbitrary" reduction axis)

    @pl.when(i == 0)
    def _init():
        acc_ref[0, 0] = jnp.float32(0.0)

    logits = logits_ref[...].astype(jnp.float32)         # in-kernel upcast, post-DMA
    tgt = target_ref[...]                                # [T, 1] int32
    m = m_ref[...]                                       # [1, C] f32

    t, c = logits.shape
    class_ids = jax.lax.broadcasted_iota(jnp.int32, (t, c), 1)
    onehot = class_ids == tgt                            # [T, C] bool

    # z[i, j] = s * (logits[i, j] - (j == y_i) * m[j])   (m[y_i] at the target column)
    z = jnp.float32(s) * (logits - jnp.where(onehot, m, jnp.float32(0.0)))

    if need_row_mask:
        # Mask garbage rows BEFORE max/exp: OOB HBM reads may contain NaN/Inf.
        row = (jax.lax.broadcasted_iota(jnp.int32, (t, 1), 0)
               + (p * tiles_per_split + i) * tile_n)
        valid = row < n_valid                            # [T, 1] bool
        z = jnp.where(valid, z, jnp.float32(0.0))

    # Numerically stable cross entropy: loss_i = logsumexp(z_i) - z_i[y_i]
    mx = jnp.max(z, axis=-1, keepdims=True)                                  # [T, 1]
    lse = mx + jnp.log(jnp.sum(jnp.exp(z - mx), axis=-1, keepdims=True))     # [T, 1]
    tgt_logit = jnp.sum(jnp.where(onehot, z, jnp.float32(0.0)),
                        axis=-1, keepdims=True)                              # [T, 1]
    per_sample = lse - tgt_logit                                             # [T, 1]

    if need_row_mask:
        per_sample = jnp.where(valid, per_sample, jnp.float32(0.0))

    acc_ref[0, 0] += jnp.sum(per_sample)

    @pl.when(i == tiles_per_split - 1)
    def _finalize():
        out_ref[...] = jnp.full(out_ref.shape, acc_ref[0, 0], dtype=jnp.float32)


def ldam_loss(logits, target, m_list, s=30.0, *, tile_n=None,
              target_block_bytes=4 << 20, vmem_fraction=0.65):
    """logits: [N, C] float (f32/bf16), target: [N] int, m_list: [C] f32 -> scalar f32."""
    assert s > 0
    n, c = logits.shape
    itemsize = jnp.dtype(logits.dtype).itemsize

    # Hardware-derived VMEM budget (falls back to v7x's 64 MiB if unavailable).
    try:
        vmem_cap = int(pltpu.get_tpu_info().vmem_capacity_bytes)
    except Exception:
        vmem_cap = 64 << 20
    vmem_budget = int(min(max(int(vmem_cap * vmem_fraction), 16 << 20), 100 << 20))

    # Estimated live VMEM bytes per batch row in one grid step:
    #   2x double-buffered native-dtype logits block
    # + ~4 f32 [T, C] intermediates (z, exp, where/onehot temps)
    # + 2x target column block (i32, lane-padded to 128 lanes)
    row_bytes = 2 * c * itemsize + 4 * c * 4 + 2 * 128 * 4

    # Auto-size tile_n in bytes (~target_block_bytes of logits per block),
    # then clamp the TILE to the VMEM budget (never the budget to the tile).
    if tile_n is None:
        tile_n = max(8, target_block_bytes // max(c * itemsize, 1))
    tile_n = int(tile_n)
    tile_n = min(tile_n, max(8, vmem_budget // max(row_bytes, 1)))
    tile_n = min(tile_n, _round_up(n, 8))
    tile_n = min(tile_n, 8192)        # TODO(synk): lane-dense target to lift this cap
    tile_n = max(8, (tile_n // 8) * 8)

    total_tiles = pl.cdiv(n, tile_n)
    n_split = 2 if total_tiles >= 2 else 1     # feed both TensorCores on v7x
    tiles_per_split = pl.cdiv(total_tiles, n_split)
    last_tile = total_tiles - 1
    covered = n_split * tiles_per_split * tile_n
    need_row_mask = covered != n               # fast path skips all masking

    # No logits padding/copy: native dtype straight from HBM, true class dim.
    target_in = target.astype(jnp.int32).reshape(n, 1)
    m_in = jnp.asarray(m_list, jnp.float32).reshape(1, c)

    if n_split * tiles_per_split > total_tiles:
        # Clamp duplicated trailing tiles onto the last real tile (their rows
        # are fully masked in-kernel, so they contribute exactly 0).
        def tile_map(p, i):
            return (jnp.minimum(p * tiles_per_split + i, last_tile), 0)
    else:
        def tile_map(p, i):
            return (p * tiles_per_split + i, 0)

    kernel = partial(_ldam_kernel, s=float(s), n_valid=int(n), tile_n=int(tile_n),
                     tiles_per_split=int(tiles_per_split),
                     need_row_mask=bool(need_row_mask))

    partials = pl.pallas_call(
        kernel,
        out_shape=jax.ShapeDtypeStruct((n_split, 1, 128), jnp.float32),
        grid=(n_split, tiles_per_split),
        in_specs=[
            pl.BlockSpec((tile_n, c), tile_map),          # logits (native dtype, true C)
            pl.BlockSpec((tile_n, 1), tile_map),          # target column
            pl.BlockSpec((1, c), lambda p, i: (0, 0)),    # m_list (resident)
        ],
        out_specs=pl.BlockSpec((1, 1, 128), lambda p, i: (p, 0, 0)),
        scratch_shapes=[pltpu.SMEM((1, 1), jnp.float32)],
        compiler_params=pltpu.CompilerParams(
            dimension_semantics=("parallel", "arbitrary"),
            vmem_limit_bytes=vmem_budget,
        ),
    )(logits, target_in, m_in)

    return jnp.sum(partials[:, 0, 0]) / jnp.float32(n)


def make_m_list(cls_num_list, max_m=0.5):
    m = 1.0 / np.sqrt(np.sqrt(np.asarray(cls_num_list, dtype=np.float64)))
    m = m * (max_m / np.max(m))
    return jnp.asarray(m, dtype=jnp.float32)


class LDAMLoss:
    """JAX/Pallas equivalent of the PyTorch LDAMLoss module (weight=None path)."""

    def __init__(self, cls_num_list, max_m=0.5, weight=None, s=30):
        assert s > 0
        if weight is not None:
            # TODO(synk): per-class weight for cross_entropy not implemented.
            raise NotImplementedError("per-class weight is not supported")
        self.m_list = make_m_list(cls_num_list, max_m)
        self.s = float(s)
        self.weight = weight

    def __call__(self, logits, target, tile_n=None):
        return ldam_loss(logits, target, self.m_list, s=self.s, tile_n=tile_n)


def ldam_loss_ref(logits, target, m_list, s=30.0):
    # Pure-JAX reference for sanity check.
    n, c = logits.shape
    onehot = jax.nn.one_hot(target, c, dtype=jnp.float32)
    adj = logits.astype(jnp.float32) - onehot * m_list[None, :]
    z = s * adj
    logp = jax.nn.log_softmax(z, axis=-1)
    return -jnp.mean(jnp.sum(onehot * logp, axis=-1))


if __name__ == "__main__":
    key = jax.random.PRNGKey(0)
    N, C = 20, 10                      # small batch, 10 classes
    cls_num_list = [100, 80, 60, 50, 40, 30, 20, 10, 5, 2]
    max_m, s = 0.5, 30.0

    loss_mod = LDAMLoss(cls_num_list, max_m=max_m, s=s)

    k1, k2 = jax.random.split(key)
    logits = jax.random.normal(k1, (N, C), dtype=jnp.float32)
    target = jax.random.randint(k2, (N,), 0, C, dtype=jnp.int32)

    ref = jax.block_until_ready(ldam_loss_ref(logits, target, loss_mod.m_list, s=s))

    # 1) Auto-sized tile (single tile at this size; ragged-row fast masking).
    loss_auto = jax.block_until_ready(loss_mod(logits, target))
    assert jnp.allclose(loss_auto, ref, rtol=1e-5, atol=1e-5), (loss_auto, ref)

    # 2) tile_n=8 exercises the multi-tile grid, the 2-way "parallel" split,
    #    per-split SMEM accumulators, tile-index clamping, and row masking.
    loss_tiled = jax.block_until_ready(loss_mod(logits, target, tile_n=8))
    assert jnp.allclose(loss_tiled, ref, rtol=1e-5, atol=1e-5), (loss_tiled, ref)

    # 3) bf16 logits: native-dtype HBM streaming with in-kernel f32 upcast.
    logits_bf16 = logits.astype(jnp.bfloat16)
    ref_bf16 = jax.block_until_ready(
        ldam_loss_ref(logits_bf16.astype(jnp.float32), target, loss_mod.m_list, s=s))
    loss_bf16 = jax.block_until_ready(loss_mod(logits_bf16, target))
    assert jnp.allclose(loss_bf16, ref_bf16, rtol=1e-3, atol=1e-3), (loss_bf16, ref_bf16)

    print("KERNEL_OK")
</pallas_src>

<mosaic_0001>
module attributes {stable_mosaic.version = 11 : i64} {
  func.func @_ldam_kernel(%arg0: i32, %arg1: i32, %arg2: memref<24x10xf32, #tpu.memory_space<vmem>>, %arg3: memref<24x1xi32, #tpu.memory_space<vmem>>, %arg4: memref<1x10xf32, #tpu.memory_space<vmem>>, %arg5: memref<1x1x128xf32, #tpu.memory_space<vmem>>, %arg6: memref<1x1xf32, #tpu.memory_space<smem>>) attributes {dimension_semantics = [#tpu.dimension_semantics<parallel>, #tpu.dimension_semantics<arbitrary>], iteration_bounds = array<i64: 1, 1>, scalar_prefetch = 0 : i64, scratch_operands = 1 : i64, tpu.core_type = #tpu.core_type<tc>, window_params = [{transform_indices = @transform_0, window_bounds = array<i64: 24, 10>}, {transform_indices = @transform_1, window_bounds = array<i64: 24, 1>}, {pipeline_mode = #tpu.pipeline_mode<synchronous>, transform_indices = @transform_2, window_bounds = array<i64: 1, 10>}, {transform_indices = @transform_3, window_bounds = array<i64: 1, 1, 128>}]} {
    %c0_i32 = arith.constant 0 : i32
    %0 = arith.cmpi eq, %arg1, %c0_i32 : i32
    %1 = arith.extui %0 : i1 to i32
    %c0_i32_0 = arith.constant 0 : i32
    %2 = arith.cmpi ne, %1, %c0_i32_0 : i32
    scf.if %2 {
      %cst_20 = arith.constant 0.000000e+00 : f32
      %c0_21 = arith.constant 0 : index
      %c0_22 = arith.constant 0 : index
      %54 = memref.load %arg6[%c0_21, %c0_22] : memref<1x1xf32, #tpu.memory_space<smem>>
      memref.store %cst_20, %arg6[%c0_21, %c0_22] : memref<1x1xf32, #tpu.memory_space<smem>>
    } else {
    }
    %c0 = arith.constant 0 : index
    %c0_1 = arith.constant 0 : index
    %3 = vector.load %arg2[%c0, %c0_1] : memref<24x10xf32, #tpu.memory_space<vmem>>, vector<24x10xf32>
    %c0_2 = arith.constant 0 : index
    %c0_3 = arith.constant 0 : index
    %4 = vector.load %arg3[%c0_2, %c0_3] : memref<24x1xi32, #tpu.memory_space<vmem>>, vector<24x1xi32>
    %c0_4 = arith.constant 0 : index
    %c0_5 = arith.constant 0 : index
    %5 = vector.load %arg4[%c0_4, %c0_5] : memref<1x10xf32, #tpu.memory_space<vmem>>, vector<1x10xf32>
    %6 = tpu.iota {dimensions = array<i32: 1>} : vector<24x10xi32>
    %7 = vector.broadcast %4 : vector<24x1xi32> to vector<24x10xi32>
    %8 = arith.cmpi eq, %6, %7 : vector<24x10xi32>
    %cst = arith.constant 0.000000e+00 : f32
    %9 = vector.shape_cast %5 : vector<1x10xf32> to vector<1x10xf32>
    %10 = vector.broadcast %9 : vector<1x10xf32> to vector<24x10xf32>
    %11 = vector.broadcast %cst : f32 to vector<24x10xf32>
    %12 = arith.select %8, %10, %11 : vector<24x10xi1>, vector<24x10xf32>
    %13 = arith.subf %3, %12 : vector<24x10xf32>
    %cst_6 = arith.constant 3.000000e+01 : f32
    %14 = vector.broadcast %cst_6 : f32 to vector<24x10xf32>
    %15 = arith.mulf %14, %13 : vector<24x10xf32>
    %16 = tpu.iota {dimensions = array<i32: 0>} : vector<24x1xi32>
    %c1_i32 = arith.constant 1 : i32
    %17 = arith.muli %arg0, %c1_i32 : i32
    %18 = arith.addi %17, %arg1 : i32
    %c24_i32 = arith.constant 24 : i32
    %19 = arith.muli %18, %c24_i32 : i32
    %20 = vector.broadcast %19 : i32 to vector<24x1xi32>
    %21 = arith.addi %16, %20 : vector<24x1xi32>
    %c20_i32 = arith.constant 20 : i32
    %22 = vector.broadcast %c20_i32 : i32 to vector<24x1xi32>
    %23 = arith.cmpi slt, %21, %22 : vector<24x1xi32>
    %cst_7 = arith.constant 0.000000e+00 : f32
    %24 = vector.shape_cast %23 : vector<24x1xi1> to vector<24x1xi1>
    %25 = vector.broadcast %24 : vector<24x1xi1> to vector<24x10xi1>
    %26 = vector.broadcast %cst_7 : f32 to vector<24x10xf32>
    %27 = arith.select %25, %15, %26 : vector<24x10xi1>, vector<24x10xf32>
    %cst_8 = arith.constant dense<0xFF800000> : vector<24xf32>
    %28 = vector.multi_reduction <maximumf>, %27, %cst_8 [1] : vector<24x10xf32> to vector<24xf32>
    %29 = vector.shape_cast %28 : vector<24xf32> to vector<24x1xf32>
    %30 = vector.broadcast %29 : vector<24x1xf32> to vector<24x10xf32>
    %31 = arith.subf %27, %30 : vector<24x10xf32>
    %32 = math.exp %31 : vector<24x10xf32>
    %cst_9 = arith.constant dense<0.000000e+00> : vector<24xf32>
    %33 = vector.multi_reduction <add>, %32, %cst_9 [1] : vector<24x10xf32> to vector<24xf32>
    %34 = vector.shape_cast %33 : vector<24xf32> to vector<24x1xf32>
    %35 = math.log %34 : vector<24x1xf32>
    %36 = arith.addf %29, %35 : vector<24x1xf32>
    %cst_10 = arith.constant 0.000000e+00 : f32
    %37 = vector.broadcast %cst_10 : f32 to vector<24x10xf32>
    %38 = arith.select %8, %27, %37 : vector<24x10xi1>, vector<24x10xf32>
    %cst_11 = arith.constant dense<0.000000e+00> : vector<24xf32>
    %39 = vector.multi_reduction <add>, %38, %cst_11 [1] : vector<24x10xf32> to vector<24xf32>
    %40 = vector.shape_cast %39 : vector<24xf32> to vector<24x1xf32>
    %41 = arith.subf %36, %40 : vector<24x1xf32>
    %cst_12 = arith.constant 0.000000e+00 : f32
    %42 = vector.broadcast %cst_12 : f32 to vector<24x1xf32>
    %43 = arith.select %23, %41, %42 : vector<24x1xi1>, vector<24x1xf32>
    %c0_13 = arith.constant 0 : index
    %c0_14 = arith.constant 0 : index
    %44 = memref.load %arg6[%c0_13, %c0_14] : memref<1x1xf32, #tpu.memory_space<smem>>
    %45 = vector.shape_cast %43 : vector<24x1xf32> to vector<1x24x1xf32>
    %cst_15 = arith.constant dense<0.000000e+00> : vector<1xf32>
    %46 = vector.multi_reduction <add>, %45, %cst_15 [1, 2] : vector<1x24x1xf32> to vector<1xf32>
    %47 = vector.shape_cast %46 : vector<1xf32> to vector<1x1x1xf32>
    %48 = vector.extract %47[0, 0, 0] : f32 from vector<1x1x1xf32>
    %49 = arith.addf %44, %48 : f32
    %c0_16 = arith.constant 0 : index
    %c0_17 = arith.constant 0 : index
    %50 = memref.load %arg6[%c0_16, %c0_17] : memref<1x1xf32, #tpu.memory_space<smem>>
    memref.store %49, %arg6[%c0_16, %c0_17] : memref<1x1xf32, #tpu.memory_space<smem>>
    %c0_i32_18 = arith.constant 0 : i32
    %51 = arith.cmpi eq, %arg1, %c0_i32_18 : i32
    %52 = arith.extui %51 : i1 to i32
    %c0_i32_19 = arith.constant 0 : i32
    %53 = arith.cmpi ne, %52, %c0_i32_19 : i32
    scf.if %53 {
      %c0_20 = arith.constant 0 : index
      %c0_21 = arith.constant 0 : index
      %54 = memref.load %arg6[%c0_20, %c0_21] : memref<1x1xf32, #tpu.memory_space<smem>>
      %55 = vector.broadcast %54 : f32 to vector<1x1x128xf32>
      %c0_22 = arith.constant 0 : index
      %c0_23 = arith.constant 0 : index
      %c0_24 = arith.constant 0 : index
      %56 = vector.load %arg5[%c0_22, %c0_23, %c0_24] : memref<1x1x128xf32, #tpu.memory_space<vmem>>, vector<1x1x128xf32>
      tpu.vector_store %arg5[%c0_22, %c0_23, %c0_24], %55 {strides = array<i32>} : memref<1x1x128xf32, #tpu.memory_space<vmem>>, vector<1x1x128xf32>,
    } else {
    }
    return
  }
  func.func @transform_0(%arg0: i32, %arg1: i32) -> (i32, i32) {
    %c1_i32 = arith.constant 1 : i32
    %0 = arith.muli %arg0, %c1_i32 : i32
    %1 = arith.addi %0, %arg1 : i32
    %c0_i32 = arith.constant 0 : i32
    %c0_i32_0 = arith.constant 0 : i32
    return %1, %c0_i32 : i32, i32
  }
  func.func @transform_1(%arg0: i32, %arg1: i32) -> (i32, i32) {
    %c1_i32 = arith.constant 1 : i32
    %0 = arith.muli %arg0, %c1_i32 : i32
    %1 = arith.addi %0, %arg1 : i32
    %c0_i32 = arith.constant 0 : i32
    %c0_i32_0 = arith.constant 0 : i32
    return %1, %c0_i32 : i32, i32
  }
  func.func @transform_2(%arg0: i32, %arg1: i32) -> (i32, i32) {
    %c0_i32 = arith.constant 0 : i32
    %c0_i32_0 = arith.constant 0 : i32
    %c0_i32_1 = arith.constant 0 : i32
    return %c0_i32, %c0_i32_0 : i32, i32
  }
  func.func @transform_3(%arg0: i32, %arg1: i32) -> (i32, i32, i32) {
    %c0_i32 = arith.constant 0 : i32
    %c0_i32_0 = arith.constant 0 : i32
    %c0_i32_1 = arith.constant 0 : i32
    return %arg0, %c0_i32, %c0_i32_0 : i32, i32, i32
  }
}

</mosaic_0001>

<bundles_post_ra>
// kernel: tpu_custom_call.1
= control target key start
LH: loop header
LB: loop body
LE: loop exit
PB: predicated region body
PF: predicated region fallthrough
CT: control target
= control target key end

     0   :  { %v270_v2 = vmov 0   ;;  %s338_s0 = inlined_call_operand.vmem [shape: f32[20,10], index: 0, kind: input, shape index: {}]   ;;  %s339_s1 = inlined_call_operand.vmem [shape: s32[20,1], index: 1, kind: input, shape index: {}]   ;;  %s340_s2 = inlined_call_operand.vmem [shape: f32[1,10], index: 2, kind: input, shape index: {}]   ;;  %s341_s3 = inlined_call_operand.hbm [shape: f32[1,1,128], index: 3, kind: output, shape index: {}]  }
   0x1   :  { %v68_v0 = vld [vmem:[%s339_s1] sm:$0xff]  ;;  %v70_v1 = vld [vmem:[%s339_s1 + $0x10] sm:$0xff]  ;;  %234 = vset.pattern.permute.xlu0 %v270_v2  ;;  %235 = vset.pattern.permute.xlu1 %v270_v2 }
   0x2   :  { %75 = vperm.xlu0 %234, %v68_v0   ;;  %81 = vperm.xlu1 %235, %v70_v1  }
   0x3   :  { %8 = vsyncpa [#allocation4], 0  ;;  %v69_v3 = vld [vmem:[%s339_s1 + $0x8] sm:$0xff]  ;;  %v72_v4 = vlaneseq  ;;  %v229_v6 = vld [vmem:[%s340_s2] ss:$0 sm:$0xff]  ;;  %vm123_vm2 = vcmask 80896  }
   0x4   :  { %v65_v8 = vld [vmem:[%s338_s0] sm:$0xff]  ;;  %v67_v10 = vld [vmem:[%s338_s0 + $0x10] sm:$0xff]  ;;  %v66_v17 = vld [vmem:[%s338_s0 + $0x8] sm:$0xff]  ;;  %vm179_vm5 = vcmask 7168   ;;  %s271_s0 = smov [#allocation3]  }
   0x5   :  { %v73_v5 = vand.u32 127, %v72_v4  ;;  %v102_v11 = vshrl.u32 %v72_v4, 7  ;;  %s209_s24 = sshll.u32 %s271_s0, 4  ;;  %s210_s24 = int_to_ptr.vmem [resolvable:$true] %s209_s24 }
   0x6   :  { %78 = vperm.xlu0 %234, %v69_v3   ;;  %s248_s26 = scalar_lea.vmem %s210_s24, 16  ;;  %s252_s27 = scalar_lea.vmem %s210_s24, 32 }
   0x7   :  { %v315_v19 = vadd.s32 16, %v102_v11  ;;  %p249_p0 = scmp.ne.s32.totalorder %s210_s24, %s248_s26  ;;  %p253_p1 = scmp.lt.s32.totalorder %s210_s24, %s210_s24 }
   0x8   :  { %p254_p2 = scmp.lt.s32.totalorder %s252_s27, %s248_s26 }
   0x9   :  { %vm113_vm4 = vcmp.lt.s32.totalorder %v315_v19, 20 }
   0xa   :  { %p255_p3 = por %p254_p2, %p253_p1 }
   0xc   :  { %p256_p4 = pnand %p255_p3, %p249_p0 }
  0x7d   :  { %v76_v7 = vpop.permute.xlu0 %75  ;;  %v82_v9 = vpop.permute.xlu1 %81 }
  0x7e   :  { %vm83_vm0 = vcmp.eq.s32.totalorder %v73_v5, %v76_v7  ;;  %vm85_vm1 = vcmp.eq.s32.totalorder %v73_v5, %v82_v9 }
  0x7f   :  { %v92_v12 = vsel %vm83_vm0, %v229_v6, 0.0  ;;  %v94_v13 = vsel %vm85_vm1, %v229_v6, 0.0 }
  0x80   :  { %v95_v14 = vsub.f32 %v65_v8, %v92_v12  ;;  %v97_v15 = vsub.f32 %v67_v10, %v94_v13 }
  0x81   :  { %v79_v16 = vpop.permute.xlu0 %78 }
  0x82   :  { %v98_v18 = vmul.f32 30.0, %v95_v14  ;;  %vm84_vm3 = vcmp.eq.s32.totalorder %v73_v5, %v79_v16  ;;  %v100_v23 = vmul.f32 30.0, %v97_v15 }
  0x83   :  { %v93_v20 = vsel %vm84_vm3, %v229_v6, 0.0 }
  0x84   :  { %v96_v21 = vsub.f32 %v66_v17, %v93_v20  ;;  %v124_v22 = vsel %vm123_vm2, %v98_v18, -inf  ;;  %v122_v26 = vsel %vm113_vm4, %v100_v23, 0.0  ;;  %v160_v41 = vsel %vm83_vm0, %v98_v18, 0.0 }
  0x85   :  { %125 = vmax.xlane.f32.xlu1 %v124_v22  ;;  %v130_v27 = vsel %vm123_vm2, %v122_v26, -inf  ;;  %v163_v43 = vsel %vm123_vm2, %v160_v41, 0.0  ;;  %v162_v45 = vsel %vm85_vm1, %v122_v26, 0.0 }
  0x86   :  { %v99_v24 = vmul.f32 30.0, %v96_v21  ;;  %v169_v47 = vsel %vm123_vm2, %v162_v45, 0.0 }
  0x88   :  { %v127_v25 = vsel %vm123_vm2, %v99_v24, -inf  ;;  %v161_v46 = vsel %vm84_vm3, %v99_v24, 0.0 }
  0x89   :  { %128 = vmax.xlane.f32.xlu0 %v127_v25  ;;  %v166_v48 = vsel %vm123_vm2, %v161_v46, 0.0 }
  0x8d   :  { %131 = vmax.xlane.f32.xlu0 %v130_v27 }
 0x10e   :  { %v126_v28 = vpop.xlane.xlu1 %125 }
 0x10f   :  { %v133_v29 = vsub.f32 %v98_v18, %v126_v28 }
 0x111   :  { %v136_v30 = vmul.f32 1.442695, %v133_v29 }
 0x112   :  { %v129_v31 = vpop.xlane.xlu0 %128 }
 0x113   :  { %236 = vpow2.f32 %v136_v30  ;;  %v134_v32 = vsub.f32 %v99_v24, %v129_v31 }
 0x115   :  { %v138_v33 = vmul.f32 1.442695, %v134_v32 }
 0x116   :  { %v132_v34 = vpop.xlane.xlu0 %131 }
 0x117   :  { %238 = vpow2.f32 %v138_v33  ;;  %v135_v35 = vsub.f32 %v122_v26, %v132_v34 }
 0x119   :  { %v140_v36 = vmul.f32 1.442695, %v135_v35 }
 0x11b   :  { %240 = vpow2.f32 %v140_v36 }
 0x120   :  { %v237_v37 = vpop.eup %236 }
 0x121   :  { %v142_v38 = vsel %vm123_vm2, %v237_v37, 0.0 }
 0x122   :  { %143 = vadd.xlane.f32.xlu1 %v142_v38 }
 0x124   :  { %v239_v39 = vpop.eup %238 }
 0x125   :  { %v145_v40 = vsel %vm123_vm2, %v239_v39, 0.0 }
 0x126   :  { %146 = vadd.xlane.f32.xlu0 %v145_v40 }
 0x128   :  { %v241_v42 = vpop.eup %240 }
 0x129   :  { %v148_v44 = vsel %vm123_vm2, %v241_v42, 0.0 }
 0x12a   :  { %164 = vadd.xlane.f32.xlu0 %v163_v43  ;;  %149 = vadd.xlane.f32.xlu1 %v148_v44 }
 0x12e   :  { %170 = vadd.xlane.f32.xlu0 %v169_v47  ;;  %167 = vadd.xlane.f32.xlu1 %v166_v48 }
 0x1ab   :  { %v144_v49 = vpop.xlane.xlu1 %143 }
 0x1ac   :  { %242 = vlog2.f32 %v144_v49 }
 0x1af   :  { %v147_v50 = vpop.xlane.xlu0 %146 }
 0x1b0   :  { %244 = vlog2.f32 %v147_v50 }
 0x1b3   :  { %v150_v51 = vpop.xlane.xlu1 %149  ;;  %v165_v56 = vpop.xlane.xlu0 %164 }
 0x1b4   :  { %246 = vlog2.f32 %v150_v51 }
 0x1b7   :  { %v168_v60 = vpop.xlane.xlu1 %167  ;;  %v171_v1 = vpop.xlane.xlu0 %170 }
 0x1b9   :  { %v243_v52 = vpop.eup %242 }
 0x1ba   :  { %v152_v53 = vmul.f32 0.6931472, %v243_v52 }
 0x1bc   :  { %v157_v57 = vadd.f32 %v152_v53, %v126_v28 }
 0x1bd   :  { %v245_v54 = vpop.eup %244 }
 0x1be   :  { %v154_v55 = vmul.f32 0.6931472, %v245_v54  ;;  %v172_v63 = vsub.f32 %v157_v57, %v165_v56 }
 0x1c0   :  { %v158_v58 = vadd.f32 %v154_v55, %v129_v31  ;;  %v180_v4 = vsel %vm179_vm5, %v172_v63, 0.0 }
 0x1c1   :  { %v247_v59 = vpop.eup %246 }
 0x1c2   :  { %v156_v61 = vmul.f32 0.6931472, %v247_v59  ;;  %v173_v62 = vsub.f32 %v158_v58, %v168_v60 }
 0x1c4   :  { %v159_v0 = vadd.f32 %v156_v61, %v132_v34  ;;  %v181_v2 = vsel %vm179_vm5, %v173_v62, 0.0 }
 0x1c5   :  { %v182_v6 = vadd.f32 %v181_v2, %v180_v4 }
 0x1c6   :  { %v174_v3 = vsub.f32 %v159_v0, %v171_v1 }
 0x1c8   :  { %v177_v5 = vsel %vm113_vm4, %v174_v3, 0.0 }
 0x1c9   :  { %v183_v7 = vsel %vm179_vm5, %v177_v5, 0.0 }
 0x1ca   :  { %v184_v8 = vadd.f32 %v183_v7, %v182_v6 }
 0x1cc   :  { %185 = vadd.xlane.f32.xlu1 %v184_v8 }
 0x255   :  { %v186_v9 = vpop.xlane.xlu1 %185 }
 0x256   :  { %v187_v10 = vrot.slane %v186_v9, 4 }
 0x258   :  { %v188_v11 = vadd.f32 %v187_v10, %v186_v9 }
 0x25a   :  { %v189_v12 = vrot.slane %v188_v11, 2 }
 0x25c   :  { %v190_v13 = vadd.f32 %v189_v12, %v188_v11 }
 0x25e   :  { %v191_v14 = vrot.slane %v190_v13, 1 }
 0x260   :  { %v192_v15 = vadd.f32 %v191_v14, %v190_v13 }
 0x262   :  { %230 = vpush %v192_v15 }
 0x293   :  { %s231_s25 = spop %230 }
 0x294   :  { %v201_v16 = vstv %s231_s25 }
 0x295   :  { %202 = vst [vmem:[#allocation3] sm:$0x1] %v201_v16 }
 0x296   :  { %259 = shalt.err (!%p256_p4)
}
 0x297   :  { %212 = dma.vmem_to_hbm [thread:$0]  %s210_s24, 16, %s341_s3, [#allocation4]  }
 0x298   :  { %268 = dma.done.wait [#allocation4], 16  }
 0x299   :  { %269 = vsyncadd [#allocation4], 4294967280 }
 0x29a   :  { %216 = vsyncpa [#allocation4], 1 }

</bundles_post_ra>
